<compile_context>
chip_gen: v7x
topology: tpu7x:2x2x1
jax: 0.10.0
libtpu: 0.0.40
codegen_flags: <defaults>
</compile_context>

<pallas_src>
import math

import jax
import jax.numpy as jnp
from jax.experimental import pallas as pl
from jax.experimental.pallas import tpu as pltpu


def _complex_diag_kernel(x_ref, real_ref, imag_ref, o_ref):
    half = real_ref.shape[-1]
    x = x_ref[...]                     # (row_tile, dim), input dtype
    real_a = x[:, :half]               # lane-tile aligned (half % 128 == 0)
    imag_a = x[:, half:]
    real_b = real_ref[...]             # (1, half), f32 -> math promotes to f32
    imag_b = imag_ref[...]
    out_re = real_a * real_b - imag_a * imag_b
    out_im = real_a * imag_b + imag_a * real_b
    # Assemble the full block and store once (lane-dense, unmasked vst).
    o_ref[...] = jnp.concatenate([out_re, out_im], axis=-1).astype(o_ref.dtype)


def _complex_diag_jnp(embeddings, real_f32, imag_f32):
    """Pure-jnp fallback / reference (XLA fuses this fine for tiny/odd shapes)."""
    half = embeddings.shape[-1] // 2
    ra = embeddings[..., :half].astype(jnp.float32)
    ia = embeddings[..., half:].astype(jnp.float32)
    out = jnp.concatenate(
        [ra * real_f32 - ia * imag_f32, ra * imag_f32 + ia * real_f32], axis=-1)
    return out.astype(embeddings.dtype)


def _choose_row_tile(rows: int, dim: int, itemsize: int) -> int:
    """Pick a big sublane-aligned row tile that fits the VMEM budget."""
    sub = 16 if itemsize == 2 else 8          # packed sublane quantum (bf16 vs f32)
    # in-block + out-block, each double-buffered => 4 * tile bytes.  16 MiB budget
    # keeps us well under v7x's 32 MiB default scoped VMEM (64 MiB physical) and
    # comfortably inside v5e/v6e's 128 MiB.
    budget_bytes = 16 * 1024 * 1024
    cap = (budget_bytes // (4 * dim * itemsize)) // sub * sub
    cap = max(sub, min(cap, 2048))
    # Aim for at least 2 grid steps so v7x can shard the row axis across its 2 TCs.
    n_tiles = max(2, pl.cdiv(rows, cap))
    row_tile = pl.cdiv(rows, n_tiles)
    row_tile = ((row_tile + sub - 1) // sub) * sub
    return max(sub, min(row_tile, cap))


def complex_diagonal_operator(embeddings: jax.Array,
                              real: jax.Array,
                              imag: jax.Array) -> jax.Array:
    """Apply the complex-diagonal operator along the last dim of `embeddings`."""
    dim = embeddings.shape[-1]
    assert dim % 2 == 0, "Even dim required"
    half = dim // 2
    assert real.shape == (half,) and imag.shape == (half,)

    real_f32 = real.astype(jnp.float32)
    imag_f32 = imag.astype(jnp.float32)

    lead_shape = embeddings.shape[:-1]
    rows = math.prod(lead_shape) if lead_shape else 1

    # Pallas only pays off with lane-dense halves and a real amount of work;
    # otherwise masked sub-128-lane stores + launch overhead dominate.
    if half % 128 != 0 or rows < 8:
        return _complex_diag_jnp(embeddings, real_f32, imag_f32)

    itemsize = jnp.dtype(embeddings.dtype).itemsize
    x2d = embeddings.reshape(rows, dim)

    row_tile = _choose_row_tile(rows, dim, itemsize)
    padded_rows = pl.cdiv(rows, row_tile) * row_tile
    if padded_rows != rows:
        x2d = jnp.pad(x2d, ((0, padded_rows - rows), (0, 0)))

    out2d = pl.pallas_call(
        _complex_diag_kernel,
        out_shape=jax.ShapeDtypeStruct((padded_rows, dim), embeddings.dtype),
        grid_spec=pltpu.PrefetchScalarGridSpec(
            num_scalar_prefetch=0,
            grid=(padded_rows // row_tile,),
            in_specs=[
                pl.BlockSpec((row_tile, dim), lambda i: (i, 0)),
                pl.BlockSpec((1, half), lambda i: (0, 0)),
                pl.BlockSpec((1, half), lambda i: (0, 0)),
            ],
            out_specs=pl.BlockSpec((row_tile, dim), lambda i: (i, 0)),
        ),
        compiler_params=pltpu.CompilerParams(
            dimension_semantics=("parallel",)),
        cost_estimate=pl.CostEstimate(
            flops=3 * padded_rows * dim,
            transcendentals=0,
            bytes_accessed=2 * padded_rows * dim * itemsize),
    )(x2d, real_f32.reshape(1, half), imag_f32.reshape(1, half))

    if padded_rows != rows:
        out2d = out2d[:rows]
    return out2d.reshape(*lead_shape, dim)


def _reference(x, real, imag):
    half = x.shape[-1] // 2
    ra = x[..., :half].astype(jnp.float32)
    ia = x[..., half:].astype(jnp.float32)
    out = jnp.concatenate([ra * real - ia * imag, ra * imag + ia * real], axis=-1)
    return out.astype(x.dtype)


if __name__ == "__main__":
    key = jax.random.PRNGKey(0)
    kx, kr, ki, kx2, kx3 = jax.random.split(key, 5)

    # --- Main Pallas path: small but lane-dense embedding dim (half = 128). ---
    batch, num, dim = 2, 64, 256
    half = dim // 2
    x = jax.random.normal(kx, (batch, num, dim), dtype=jnp.float32)
    # Parameters mirror nn.Module init (ones / zeros), perturbed so the complex
    # multiply is nontrivial; kept in f32 like the PyTorch parameters.
    real = jnp.ones((half,), jnp.float32) + 0.1 * jax.random.normal(kr, (half,), jnp.float32)
    imag = jnp.zeros((half,), jnp.float32) + 0.1 * jax.random.normal(ki, (half,), jnp.float32)

    out = jax.block_until_ready(complex_diagonal_operator(x, real, imag))
    ref = _reference(x, real, imag)
    assert out.shape == x.shape and out.dtype == x.dtype
    assert jnp.allclose(out, ref, atol=1e-6, rtol=1e-6)

    # --- bf16 input through the Pallas path (math in f32, output bf16). ---
    x_bf16 = jax.random.normal(kx2, (4, 32, dim), dtype=jnp.bfloat16)
    out_bf16 = jax.block_until_ready(complex_diagonal_operator(x_bf16, real, imag))
    ref_bf16 = _reference(x_bf16, real, imag)
    assert out_bf16.dtype == jnp.bfloat16
    assert jnp.allclose(out_bf16.astype(jnp.float32),
                        ref_bf16.astype(jnp.float32), atol=2e-2, rtol=2e-2)

    # --- Tiny / non-lane-dense dim: wrapper falls back to fused jnp math. ---
    x_small = jax.random.normal(kx3, (2, 8, 32), dtype=jnp.float32)
    r_small = jnp.ones((16,), jnp.float32)
    i_small = 0.1 * jnp.arange(16, dtype=jnp.float32)
    out_small = jax.block_until_ready(
        complex_diagonal_operator(x_small, r_small, i_small))
    ref_small = _reference(x_small, r_small, i_small)
    assert jnp.allclose(out_small, ref_small, atol=1e-6, rtol=1e-6)

    print("KERNEL_OK")
</pallas_src>

<mosaic_0001>
module attributes {stable_mosaic.version = 11 : i64} {
  func.func @_complex_diag_kernel(%arg0: i32, %arg1: memref<64x256xf32, #tpu.memory_space<vmem>>, %arg2: memref<1x128xf32, #tpu.memory_space<vmem>>, %arg3: memref<1x128xf32, #tpu.memory_space<vmem>>, %arg4: memref<64x256xf32, #tpu.memory_space<vmem>>) attributes {dimension_semantics = [#tpu.dimension_semantics<parallel>], iteration_bounds = array<i64: 2>, scalar_prefetch = 0 : i64, scratch_operands = 0 : i64, tpu.core_type = #tpu.core_type<tc>, window_params = [{transform_indices = @transform_0, window_bounds = array<i64: 64, 256>}, {pipeline_mode = #tpu.pipeline_mode<synchronous>, transform_indices = @transform_1, window_bounds = array<i64: 1, 128>}, {pipeline_mode = #tpu.pipeline_mode<synchronous>, transform_indices = @transform_2, window_bounds = array<i64: 1, 128>}, {transform_indices = @transform_3, window_bounds = array<i64: 64, 256>}]} {
    %c0 = arith.constant 0 : index
    %c0_0 = arith.constant 0 : index
    %0 = vector.load %arg1[%c0, %c0_0] : memref<64x256xf32, #tpu.memory_space<vmem>>, vector<64x256xf32>
    %1 = vector.extract_strided_slice %0 {offsets = [0, 0], sizes = [64, 128], strides = [1, 1]} : vector<64x256xf32> to vector<64x128xf32>
    %2 = vector.extract_strided_slice %0 {offsets = [0, 128], sizes = [64, 128], strides = [1, 1]} : vector<64x256xf32> to vector<64x128xf32>
    %c0_1 = arith.constant 0 : index
    %c0_2 = arith.constant 0 : index
    %3 = vector.load %arg2[%c0_1, %c0_2] : memref<1x128xf32, #tpu.memory_space<vmem>>, vector<1x128xf32>
    %c0_3 = arith.constant 0 : index
    %c0_4 = arith.constant 0 : index
    %4 = vector.load %arg3[%c0_3, %c0_4] : memref<1x128xf32, #tpu.memory_space<vmem>>, vector<1x128xf32>
    %5 = vector.broadcast %3 : vector<1x128xf32> to vector<64x128xf32>
    %6 = arith.mulf %1, %5 : vector<64x128xf32>
    %7 = vector.broadcast %4 : vector<1x128xf32> to vector<64x128xf32>
    %8 = arith.mulf %2, %7 : vector<64x128xf32>
    %9 = arith.subf %6, %8 : vector<64x128xf32>
    %10 = vector.broadcast %4 : vector<1x128xf32> to vector<64x128xf32>
    %11 = arith.mulf %1, %10 : vector<64x128xf32>
    %12 = vector.broadcast %3 : vector<1x128xf32> to vector<64x128xf32>
    %13 = arith.mulf %2, %12 : vector<64x128xf32>
    %14 = arith.addf %11, %13 : vector<64x128xf32>
    %15 = tpu.concatenate %9, %14 in 1 : vector<64x128xf32>, vector<64x128xf32> -> vector<64x256xf32>
    %c0_5 = arith.constant 0 : index
    %c0_6 = arith.constant 0 : index
    %16 = vector.load %arg4[%c0_5, %c0_6] : memref<64x256xf32, #tpu.memory_space<vmem>>, vector<64x256xf32>
    tpu.vector_store %arg4[%c0_5, %c0_6], %15 {strides = array<i32>} : memref<64x256xf32, #tpu.memory_space<vmem>>, vector<64x256xf32>,
    return
  }
  func.func @transform_0(%arg0: i32) -> (i32, i32) {
    %c0_i32 = arith.constant 0 : i32
    %c0_i32_0 = arith.constant 0 : i32
    return %arg0, %c0_i32 : i32, i32
  }
  func.func @transform_1(%arg0: i32) -> (i32, i32) {
    %c0_i32 = arith.constant 0 : i32
    %c0_i32_0 = arith.constant 0 : i32
    %c0_i32_1 = arith.constant 0 : i32
    return %c0_i32, %c0_i32_0 : i32, i32
  }
  func.func @transform_2(%arg0: i32) -> (i32, i32) {
    %c0_i32 = arith.constant 0 : i32
    %c0_i32_0 = arith.constant 0 : i32
    %c0_i32_1 = arith.constant 0 : i32
    return %c0_i32, %c0_i32_0 : i32, i32
  }
  func.func @transform_3(%arg0: i32) -> (i32, i32) {
    %c0_i32 = arith.constant 0 : i32
    %c0_i32_0 = arith.constant 0 : i32
    return %arg0, %c0_i32 : i32, i32
  }
}

</mosaic_0001>

<bundles_post_ra>
// kernel: tpu_custom_call.1
= control target key start
LH: loop header
LB: loop body
LE: loop exit
PB: predicated region body
PF: predicated region fallthrough
CT: control target
= control target key end

     0   :  { %8 = vsyncpa [#allocation3], 0  ;;  %s815_s0 = inlined_call_operand.hbm [shape: f32[128,256], index: 0, kind: input, shape index: {}]   ;;  %s816_s1 = inlined_call_operand.vmem [shape: f32[1,128], index: 1, kind: input, shape index: {}]   ;;  %s817_s2 = inlined_call_operand.vmem [shape: f32[1,128], index: 2, kind: input, shape index: {}]   ;;  %s818_s3 = inlined_call_operand.hbm [shape: f32[128,256], index: 3, kind: output, shape index: {}]  }
   0x1   :  { %10 = vsyncpa [#allocation3 + $0x1], 0 }
   0x2   :  { %11 = vsyncpa [#allocation4], 0 }
   0x3   :  { %13 = vsyncpa [#allocation4 + $0x1], 0  ;;  %s570_s12 = smov 0   ;;  %s572_s13 = smov 0  }
   0x4   :  { %s574_s14 = smov 0   ;;  %s576_s15 = smov 0  }
   0x5 LB: > { %s591_s16 = sadd.s32 4294967295, %s542_s15   ;;  %s374_s17 = sadd.s32 4294967294, %s542_s15   ;;  %s542_s15 = sphi %s576_s15, %s831_s15   ;;  %s538_s14 = sphi %s574_s14, %s830_s14   ;;  %s534_s13 = sphi %s572_s13, %s829_s13   ;;  %s530_s12 = sphi %s570_s12, %s828_s12  }
   0x6   : > { %s595_s18 = sadd.s32 1, %s542_s15   ;;  %s26_s19 = sadd.s32 1, %s538_s14 }
   0x7   : > { %s23_s20 = ssub.s32 %s542_s15, %s595_s18  ;;  %p33_p0 = scmp.ne.s32.totalorder %s538_s14, %s534_s13 }
   0x8   : > { %p24_p1 = scmp.eq.s32.totalorder %s23_s20, 0  ;;  %p34_p2 = scmp.eq.s32.totalorder %s542_s15, 0 }
   0x9   : > { %p39_p3 = scmp.ne.s32.totalorder %s534_s13, %s530_s12  ;;  %p40_p4 = scmp.eq.s32.totalorder %s591_s16, 0 }
   0xa   : > { %s607_s21 = scalar_select %p24_p1, %s538_s14, %s26_s19  }
   0xb   : > { %p609_p5 = por %p34_p2, %p33_p0  ;;  %p613_p6 = por %p40_p4, %p39_p3 }
   0xc   : > { %p105_p7 = scmp.eq.s32.totalorder %s591_s16, 1  ;;  %p111_p8 = scmp.eq.s32.totalorder %s374_s17, 1 }
   0xd   : > { %p408_p10 = scmp.lt.s32.totalorder %s542_s15, 2  ;;  %s137_s26 = sand.u32 1, %s538_s14  }
   0xe   : > { %p620_p11 = por %p105_p7, %p33_p0  ;;  %p624_p12 = por %p111_p8, %p39_p3 }
   0xf   : > { %s393_s27 = sshll.u32 %s542_s15, 11  ;;  %s377_s28 = sshll.u32 %s137_s26, 7 }
  0x10   : > { %s822_s24 = scalar_select %p620_p11, 1, 0 }
  0x11   : > { %s823_s25 = scalar_select %p624_p12, 1, 0 }
  0x12   : > { %s633_s4 = scalar_lea.hbm %s815_s0, %s393_s27  ;;  %s141_s5 = scalar_lea.vmem [#allocation2], %s377_s28 }
  0x13   : > { %s149_s6 = sshll.u32 %s141_s5, 4  ;;  %p637_p13 = pnand %p408_p10, %p609_p5  ;;  %s641_s6 = int_to_ptr.vmem [resolvable:$true] %s149_s6 }
  0x14   : > { %s643_s8 = scalar_lea.sflag [#allocation3], %s137_s26  ;;  %s446_s9 = scalar_lea.hbm %s633_s4, 2048 }
  0x15   : > { %p447_p0 = scmp.ne.s32.totalorder %s633_s4, %s446_s9  ;;  %p448_p1 = pneg %p637_p13 }
  0x16   : > { %s451_s17 = scalar_lea.hbm %s815_s0, 4096  ;;  %p452_p4 = scmp.lt.u32.totalorder %s633_s4, %s815_s0 }
  0x17   : > { %p449_p2 = pnand %p448_p1, %p447_p0  ;;  %p453_p5 = scmp.lt.u32.totalorder %s451_s17, %s446_s9 }
  0x18   : > { %p455_p8 = scmp.lt.u32.totalorder %s446_s9, %s633_s4 }
  0x19   : > { %p450_p3 = pneg %p449_p2  ;;  %p454_p7 = por %p453_p5, %p452_p4 }
  0x1b   : > { %p456_p10 = por %p455_p8, %p454_p7 }
  0x1d   : > { %p457_p9 = pnand %p456_p10, %p450_p3 }
  0x1f   : > { %460 = shalt.err (!%p457_p9)
}
  0x20   : > { %s461_s22 = scalar_lea.vmem %s641_s6, 2048  ;;  %s544_s26 = smov [#allocation2]  }
  0x21   : > { %p462_p0 = scmp.ne.s32.totalorder %s641_s6, %s461_s22  ;;  %s466_s27 = sshll.u32 %s544_s26, 4  ;;  %s467_s27 = int_to_ptr.vmem [resolvable:$false] %s466_s27 }
  0x22   : > { %s468_s28 = scalar_lea.vmem %s467_s27, 4096  ;;  %p469_p11 = scmp.lt.s32.totalorder %s641_s6, %s467_s27 }
  0x23   : > { %p464_p2 = pnand %p462_p0, %p448_p1  ;;  %p470_p4 = scmp.lt.s32.totalorder %s468_s28, %s461_s22 }
  0x25   : > { %p465_p12 = pneg %p464_p2  ;;  %p471_p5 = por %p470_p4, %p469_p11 }
  0x27   : > { %p472_p7 = pnand %p471_p5, %p465_p12 }
  0x29   : > { %475 = shalt.err (!%p472_p7)
}
  0x2a   : > { %s545_s29 = smov 256   ;;  %s546_s30 = smov 16  }
  0x2b   : > { %403 = dma.hbm_to_vmem [thread:$0]  (!%p637_p13), %s633_s4, 2048, %s641_s6, %s643_s8, %s545_s29, %s545_s29, %s546_s30  }
  0x2c   : > { %p381_p9 = scmp.ge.s32.totalorder %s542_s15, 1  ;;  %p157_p1 = scmp.lt.s32.totalorder %s542_s15, 3 }
  0x2e   : > { %p158_p3 = pnand %p381_p9, %p157_p1 }
  0x2f   : > { %s674_s5 = sand.u32 (!%p158_p3), 1, %s534_s13  }
  0x30   : > { %161 = sbr.rel (%p158_p3) target bundleno = 89 (0x59), region = 32  ;;  %s382_s9 = sshll.u32 (!%p158_p3), %s674_s5, 7 }
  0x31   : > { %s164_s10 = scalar_lea.sflag (!%p158_p3), [#allocation3], %s674_s5  ;;  %s680_s11 = scalar_lea.vmem (!%p158_p3), [#allocation2], %s382_s9 }
  0x37   : > { %521 = dma.done.wait (%p613_p6), %s164_s10, 2048  }
  0x38   : > { %523 = vsyncadd (%p613_p6), %s164_s10, 4294965248  ;;  %v192_v0 = vld [vmem:[%s680_s11] sm:$0xff]  ;;  %v193_v1 = vld [vmem:[%s680_s11 + $0x8] sm:$0xff]  ;;  %s723_s23 = scalar_lea.vmem [#allocation5], %s382_s9  ;;  %s395_s17 = sshll.u32 %s591_s16, 11 }
  0x39   : > { %v691_v2 = vld [vmem:[%s816_s1] ss:$0 sm:$0xff]  ;;  %v194_v6 = vld [vmem:[%s680_s11 + $0x10] sm:$0xff]  ;;  %v195_v7 = vld [vmem:[%s680_s11 + $0x18] sm:$0xff]  ;;  %s301_s19 = sshll.u32 %s723_s23, 4  ;;  %s765_s22 = scalar_lea.hbm %s818_s3, %s395_s17  ;;  %s767_s19 = int_to_ptr.vmem [resolvable:$true] %s301_s19 }
  0x3a   : > { %v696_v3 = vld [vmem:[%s817_s2] ss:$0 sm:$0xff]  ;;  %v216_v4 = vmul.f32 %v691_v2, %v192_v0  ;;  %v254_v5 = vmul.f32 %v691_v2, %v193_v1  ;;  %v217_v10 = vmul.f32 %v691_v2, %v194_v6  ;;  %v197_v13 = vld [vmem:[%s680_s11 + $0x28] sm:$0xff]  ;;  %v198_v14 = vld [vmem:[%s680_s11 + $0x30] sm:$0xff]  ;;  %v255_v16 = vmul.f32 %v691_v2, %v195_v7  ;;  %s287_s26 = scalar_lea.sflag [#allocation4], %s674_s5  ;;  %s476_s27 = scalar_lea.vmem %s767_s19, 2048 }
  0x3b   : > { %v230_v8 = vmul.f32 %v696_v3, %v193_v1  ;;  %v246_v9 = vmul.f32 %v696_v3, %v192_v0  ;;  %v231_v11 = vmul.f32 %v696_v3, %v195_v7  ;;  %v196_v12 = vld [vmem:[%s680_s11 + $0x20] sm:$0xff]  ;;  %v247_v15 = vmul.f32 %v696_v3, %v194_v6  ;;  %v199_v19 = vld [vmem:[%s680_s11 + $0x38] sm:$0xff]  ;;  %v201_v25 = vld [vmem:[%s680_s11 + $0x48] sm:$0xff]  ;;  %p477_p6 = scmp.ne.s32.totalorder %s767_s19, %s476_s27  ;;  %p825_p11 = scmp.ne.s32.totalorder %s822_s24, 0 }
  0x3c   : > { %v218_v17 = vmul.f32 %v691_v2, %v196_v12  ;;  %v232_v18 = vmul.f32 %v696_v3, %v197_v13  ;;  %v200_v20 = vld [vmem:[%s680_s11 + $0x40] sm:$0xff]  ;;  %v248_v24 = vmul.f32 %v696_v3, %v196_v12  ;;  %v256_v28 = vmul.f32 %v691_v2, %v197_v13  ;;  %v202_v30 = vld [vmem:[%s680_s11 + $0x50] sm:$0xff]  ;;  %v203_v31 = vld [vmem:[%s680_s11 + $0x58] sm:$0xff]  ;;  %s547_s28 = smov [#allocation5]  }
  0x3d   : > { %v238_v21 = vsub.f32 %v216_v4, %v230_v8  ;;  %v262_v22 = vadd.f32 %v254_v5, %v246_v9  ;;  %v239_v23 = vsub.f32 %v217_v10, %v231_v11  ;;  %v263_v26 = vadd.f32 %v255_v16, %v247_v15  ;;  %v204_v40 = vld [vmem:[%s680_s11 + $0x60] sm:$0xff]  ;;  %v205_v41 = vld [vmem:[%s680_s11 + $0x68] sm:$0xff]  ;;  %v206_v46 = vld [vmem:[%s680_s11 + $0x70] sm:$0xff]  ;;  %p478_p12 = pnand %p477_p6, %p825_p11  ;;  %s480_s29 = sshll.u32 %s547_s28, 4  ;;  %s481_s29 = int_to_ptr.vmem [resolvable:$false] %s480_s29 }
  0x3e   : > { %v240_v27 = vsub.f32 %v218_v17, %v232_v18  ;;  %v219_v29 = vmul.f32 %v691_v2, %v198_v14  ;;  %v233_v32 = vmul.f32 %v696_v3, %v199_v19  ;;  %v249_v33 = vmul.f32 %v696_v3, %v198_v14  ;;  %v207_v47 = vld [vmem:[%s680_s11 + $0x78] sm:$0xff]  ;;  %s482_s30 = scalar_lea.vmem %s481_s29, 4096  ;;  %p483_p8 = scmp.lt.s32.totalorder %s767_s19, %s481_s29 }
  0x3f   : > { %270 = vst [vmem:[%s723_s23] sm:$0xff] %v238_v21  ;;  %271 = vst [vmem:[%s723_s23 + $0x8] sm:$0xff] %v262_v22  ;;  %v257_v34 = vmul.f32 %v691_v2, %v199_v19  ;;  %v220_v35 = vmul.f32 %v691_v2, %v200_v20  ;;  %v264_v36 = vadd.f32 %v256_v28, %v248_v24  ;;  %p479_p13 = pneg %p478_p12  ;;  %p484_p10 = scmp.lt.s32.totalorder %s482_s30, %s476_s27 }
  0x40   : > { %272 = vst [vmem:[%s723_s23 + $0x10] sm:$0xff] %v239_v23  ;;  %273 = vst [vmem:[%s723_s23 + $0x18] sm:$0xff] %v263_v26  ;;  %v234_v37 = vmul.f32 %v696_v3, %v201_v25  ;;  %v250_v38 = vmul.f32 %v696_v3, %v200_v20  ;;  %v258_v39 = vmul.f32 %v691_v2, %v201_v25 }
  0x41   : > { %274 = vst [vmem:[%s723_s23 + $0x20] sm:$0xff] %v240_v27  ;;  %v241_v42 = vsub.f32 %v219_v29, %v233_v32  ;;  %v265_v43 = vadd.f32 %v257_v34, %v249_v33  ;;  %v221_v44 = vmul.f32 %v691_v2, %v202_v30  ;;  %v235_v45 = vmul.f32 %v696_v3, %v203_v31  ;;  %p485_p0 = por %p484_p10, %p483_p8 }
  0x42   : > { %275 = vst [vmem:[%s723_s23 + $0x28] sm:$0xff] %v264_v36  ;;  %v242_v48 = vsub.f32 %v220_v35, %v234_v37  ;;  %v266_v49 = vadd.f32 %v258_v39, %v250_v38  ;;  %v251_v50 = vmul.f32 %v696_v3, %v202_v30  ;;  %v259_v51 = vmul.f32 %v691_v2, %v203_v31 }
  0x43   : > { %276 = vst [vmem:[%s723_s23 + $0x30] sm:$0xff] %v241_v42  ;;  %277 = vst [vmem:[%s723_s23 + $0x38] sm:$0xff] %v265_v43  ;;  %v243_v52 = vsub.f32 %v221_v44, %v235_v45  ;;  %v222_v53 = vmul.f32 %v691_v2, %v204_v40  ;;  %v236_v54 = vmul.f32 %v696_v3, %v205_v41  ;;  %p486_p2 = pnand %p485_p0, %p479_p13 }
  0x44   : > { %v252_v55 = vmul.f32 %v696_v3, %v204_v40  ;;  %278 = vst [vmem:[%s723_s23 + $0x40] sm:$0xff] %v242_v48  ;;  %279 = vst [vmem:[%s723_s23 + $0x48] sm:$0xff] %v266_v49  ;;  %v267_v56 = vadd.f32 %v259_v51, %v251_v50  ;;  %v260_v57 = vmul.f32 %v691_v2, %v205_v41 }
  0x45   : > { %v223_v58 = vmul.f32 %v691_v2, %v206_v46  ;;  %v237_v59 = vmul.f32 %v696_v3, %v207_v47  ;;  %280 = vst [vmem:[%s723_s23 + $0x50] sm:$0xff] %v243_v52  ;;  %v244_v60 = vsub.f32 %v222_v53, %v236_v54  ;;  %v253_v61 = vmul.f32 %v696_v3, %v206_v46 }
  0x46   : > { %v261_v62 = vmul.f32 %v691_v2, %v207_v47  ;;  %281 = vst [vmem:[%s723_s23 + $0x58] sm:$0xff] %v267_v56  ;;  %v268_v63 = vadd.f32 %v260_v57, %v252_v55 }
  0x47   : > { %v245_v0 = vsub.f32 %v223_v58, %v237_v59  ;;  %282 = vst [vmem:[%s723_s23 + $0x60] sm:$0xff] %v244_v60 }
  0x48   : > { %v269_v1 = vadd.f32 %v261_v62, %v253_v61  ;;  %283 = vst [vmem:[%s723_s23 + $0x68] sm:$0xff] %v268_v63 }
  0x49   : > { %284 = vst [vmem:[%s723_s23 + $0x70] sm:$0xff] %v245_v0 }
  0x4a   : > { %285 = vst [vmem:[%s723_s23 + $0x78] sm:$0xff] %v269_v1 }
  0x4b   : > { %489 = shalt.err (!%p486_p2)
}
  0x4c   : > { %s490_s9 = scalar_lea.hbm %s765_s22, 2048  ;;  %s494_s4 = scalar_lea.hbm %s818_s3, 4096 }
  0x4d   : > { %p491_p4 = scmp.ne.s32.totalorder %s765_s22, %s490_s9  ;;  %p495_p9 = scmp.lt.u32.totalorder %s765_s22, %s818_s3 }
  0x4e   : > { %p496_p1 = scmp.lt.u32.totalorder %s494_s4, %s490_s9  ;;  %p498_p6 = scmp.lt.u32.totalorder %s490_s9, %s765_s22 }
  0x4f   : > { %p492_p5 = pnand %p491_p4, %p825_p11 }
  0x50   : > { %p497_p3 = por %p496_p1, %p495_p9 }
  0x51   : > { %p493_p7 = pneg %p492_p5 }
  0x52   : > { %p499_p12 = por %p498_p6, %p497_p3 }
  0x54   : > { %p500_p13 = pnand %p499_p12, %p493_p7 }
  0x56   : > { %503 = shalt.err (!%p500_p13)
}
  0x57   : > { %s548_s8 = smov 256   ;;  %s549_s23 = smov 16  }
  0x58   : > { %398 = dma.vmem_to_hbm [thread:$0]  (%p825_p11), %s767_s19, 2048, %s765_s22, %s287_s26, %s548_s8, %s548_s8, %s549_s23  }
  0x59 PF: > { %s316_s17 = sand.u32 1, %s530_s12   ;;  %p826_p8 = scmp.ne.s32.totalorder %s823_s25, 0 }
  0x5a   : > { %p827_p10 = scmp.ge.s32.totalorder %s542_s15, 2  ;;  %s317_s16 = scalar_lea.sflag [#allocation4], %s316_s17 }
  0x5c   : > { %p405_p0 = pnand %p827_p10, %p826_p8 }
  0x5e   : > { %525 = dma.done.wait (!%p405_p0), %s317_s16, 2048  }
  0x5f   : > { %527 = vsyncadd (!%p405_p0), %s317_s16, 4294965248  ;;  %p16_p2 = scmp.ge.s32.totalorder %s595_s18, 4   ;;  %s828_s12 = smov %s534_s13 }
  0x60   : > { %s829_s13 = smov %s538_s14  ;;  %s830_s14 = smov %s607_s21 }
  0x61   : > { %s831_s15 = smov %s595_s18  ;;  %18 = sbr.rel (!%p16_p2) target bundleno = 5 (0x5), region = 77 }
  0x68   :  { %322 = vsyncpa [#allocation3], 1 }
  0x69   :  { %324 = vsyncpa [#allocation3 + $0x1], 1 }
  0x6a   :  { %325 = vsyncpa [#allocation4], 1 }
  0x6b   :  { %327 = vsyncpa [#allocation4 + $0x1], 1 }

</bundles_post_ra>
